<compile_context>
chip_gen: v7x
topology: tpu7x:2x2x1
jax: 0.10.0
libtpu: 0.0.40
codegen_flags: <defaults>
</compile_context>

<pallas_src>
import math

import jax
import jax.numpy as jnp
from jax.experimental import pallas as pl
from jax.experimental.pallas import tpu as pltpu


def _hbm_copy_kernel(x_hbm, o_hbm, sem):
    # Single whole-array HBM->HBM DMA; no VMEM bounce, no grid steps.
    cp = pltpu.make_async_copy(x_hbm, o_hbm, sem)
    cp.start()
    cp.wait()


def view_flatten(x, *, use_pallas=False):
    """Pallas equivalent of torch's `x.view(x.size(0), -1)`.

    Default (`use_pallas=False`) is the recommended metadata-only reshape.
    `use_pallas=True` forces materialization via a direct HBM->HBM DMA.
    """
    b = x.shape[0]
    flat = math.prod(x.shape[1:]) if x.ndim > 1 else 1

    # Metadata-only flatten; free in XLA for contiguous inputs.
    x2 = jnp.reshape(x, (b, flat))

    # Fast path (default), plus degenerate-shape guards: zero-sized arrays and
    # ndim<=1 gain nothing from a kernel and would only emit pathological DMAs.
    if not use_pallas or x.size == 0 or x.ndim <= 1:
        return x2

    itemsize = jnp.dtype(x.dtype).itemsize
    return pl.pallas_call(
        _hbm_copy_kernel,
        out_shape=jax.ShapeDtypeStruct((b, flat), x.dtype),
        in_specs=[pl.BlockSpec(memory_space=pl.ANY)],
        out_specs=pl.BlockSpec(memory_space=pl.ANY),
        scratch_shapes=[pltpu.SemaphoreType.DMA(())],
        cost_estimate=pl.CostEstimate(
            flops=0,
            transcendentals=0,
            bytes_accessed=2 * x.size * itemsize,
        ),
    )(x2)


if __name__ == "__main__":
    key = jax.random.PRNGKey(0)

    # Small NCHW input consistent with an AlexNet-style feature map.
    x = jax.random.normal(key, (2, 4, 16, 16), dtype=jnp.float32)
    y_ref = jnp.reshape(x, (x.shape[0], -1))

    # 1) Default fast path: metadata-only reshape, no HBM round trip.
    y_fast = view_flatten(x)
    jax.block_until_ready(y_fast)
    assert y_fast.shape == (2, 4 * 16 * 16), y_fast.shape
    assert y_fast.dtype == x.dtype
    assert jnp.array_equal(y_fast, y_ref)

    # 2) Forced-materialization path: single HBM->HBM DMA Pallas kernel.
    y_kernel = view_flatten(x, use_pallas=True)
    jax.block_until_ready(y_kernel)
    assert y_kernel.shape == (2, 4 * 16 * 16), y_kernel.shape
    assert y_kernel.dtype == x.dtype
    assert jnp.array_equal(y_kernel, y_ref)

    # 3) DMA path with a flat size that is not a multiple of 128 and b > 8
    #    (the DMA is layout-agnostic, so no masked-store penalty to worry about).
    x2 = jax.random.normal(jax.random.PRNGKey(1), (16, 3, 10, 11), dtype=jnp.float32)
    y2 = view_flatten(x2, use_pallas=True)
    jax.block_until_ready(y2)
    assert y2.shape == (16, 3 * 10 * 11), y2.shape
    assert jnp.array_equal(y2, jnp.reshape(x2, (x2.shape[0], -1)))

    # 4) Degenerate-shape guard: zero-sized trailing dims route to the fast path.
    x0 = jnp.zeros((2, 0, 4, 4), dtype=jnp.float32)
    y0 = view_flatten(x0, use_pallas=True)
    jax.block_until_ready(y0)
    assert y0.shape == (2, 0), y0.shape

    print("KERNEL_OK")
</pallas_src>

<mosaic_0001>
module attributes {stable_mosaic.version = 11 : i64} {
  func.func @_hbm_copy_kernel(%arg0: memref<2x1024xf32, #tpu.memory_space<any>>, %arg1: memref<2x1024xf32, #tpu.memory_space<any>>, %arg2: memref<!tpu.dma_semaphore, #tpu.memory_space<semaphore_mem>>) attributes {dimension_semantics = [], scalar_prefetch = 0 : i64, scratch_operands = 1 : i64, tpu.core_type = #tpu.core_type<tc>} {
    tpu.enqueue_dma source(%arg0 : memref<2x1024xf32, #tpu.memory_space<any>>) target(%arg1 : memref<2x1024xf32, #tpu.memory_space<any>>) target_semaphore(%arg2 : memref<!tpu.dma_semaphore, #tpu.memory_space<semaphore_mem>>)
    tpu.wait_dma2 semaphore(%arg2 : memref<!tpu.dma_semaphore, #tpu.memory_space<semaphore_mem>>) src(%arg0 : memref<2x1024xf32, #tpu.memory_space<any>>) dst(%arg1 : memref<2x1024xf32, #tpu.memory_space<any>>)
    return
  }
}

</mosaic_0001>

<bundles_post_ra>
// kernel: tpu_custom_call.1
= control target key start
LH: loop header
LB: loop body
LE: loop exit
PB: predicated region body
PF: predicated region fallthrough
CT: control target
= control target key end

     0   :  { %s35_s6 = smov [#allocation2]   ;;  %s36_s7 = smov [#allocation3]   ;;  %s54_s0 = inlined_call_operand.hbm [shape: f32[2,1024], index: 0, kind: input, shape index: {}]   ;;  %s55_s1 = inlined_call_operand.hbm [shape: f32[2,1024], index: 1, kind: output, shape index: {}]  }
   0x1   :  { %s37_s8 = smov 0  }
   0x2   :  { %18 = dma.general %s54_s0, 256, %s55_s1, %s35_s6, %s36_s7, [#allocation4], %s37_s8, 0  }
   0x3   :  { %33 = dma.done.wait [#allocation2], 256 }
   0x4   :  { %34 = vsyncadd [#allocation2], 4294967040 }
   0x5   :  { %23 = vsyncmov [#allocation2] }
   0x8   :  { %s24_s13 = vpop.sfrf %23 }
   0x9   :  { %p29_p0 = scmp.ne.s32.totalorder %s24_s13, 0 }
   0xb   :  { %28 = shalt.err (%p29_p0)  }

</bundles_post_ra>
